<compile_context>
chip_gen: v7x
topology: tpu7x:2x2x1
jax: 0.10.0
libtpu: 0.0.40
codegen_flags: <defaults>
</compile_context>

<pallas_src>
import functools

import jax
import jax.numpy as jnp
from jax.experimental import pallas as pl
from jax.experimental.pallas import tpu as pltpu

LANE = 128  # vreg lane width: pad all channel/lane dims to this


# ----------------------------- Pallas kernels ------------------------------ #

def _conv_act_kernel(a_ref, w_ref, b_ref, o_ref, *, act):
    """(TM, K) @ (K, 128) + bias, then activation. Runs on the MXU."""
    acc = jnp.dot(a_ref[...], w_ref[...], preferred_element_type=jnp.float32)
    acc = acc + b_ref[...]                       # (1, 128) broadcasts over rows
    if act == "leaky":
        acc = jnp.where(acc >= 0.0, acc, 0.2 * acc)
    elif act == "tanh":
        acc = jnp.tanh(acc)
    o_ref[...] = acc.astype(o_ref.dtype)


def _conv_bn_leaky_kernel(a_ref, w_ref, g_ref, bt_ref, o_ref, *, eps, inv_m):
    """Fused conv-matmul + BatchNorm(batch stats) + LeakyReLU(0.2).

    The whole (M, 128) output tile lives in one block, so the batch mean/var
    reduction over M happens in-kernel (XLU) with no extra HBM round trip.
    The conv bias is omitted: it cancels exactly against the batch mean.
    """
    y = jnp.dot(a_ref[...], w_ref[...], preferred_element_type=jnp.float32)
    mean = jnp.sum(y, axis=0, keepdims=True) * inv_m          # (1, 128)
    var = jnp.sum((y - mean) ** 2, axis=0, keepdims=True) * inv_m
    scale = g_ref[...] * jax.lax.rsqrt(var + eps)
    shift = bt_ref[...] - mean * scale
    out = y * scale + shift
    o_ref[...] = jnp.where(out >= 0.0, out, 0.2 * out).astype(o_ref.dtype)


# ----------------------------- Wrapper helpers ------------------------------ #

def _round_up(x, m):
    return ((x + m - 1) // m) * m


def _pad_vec(v, lane=LANE):
    """(oc,) -> (1, lane) zero-padded row vector."""
    return jnp.pad(v, (0, lane - v.shape[0])).reshape(1, lane)


def _prep_weight(w, ic_pad, oc_pad=LANE):
    """PyTorch OIHW -> (KH*KW*ic_pad, oc_pad), feature order (kh, kw, ic)."""
    oc, ic, kh, kw = w.shape
    wt = jnp.transpose(w, (2, 3, 1, 0))                         # (kh, kw, ic, oc)
    wt = jnp.pad(wt, ((0, 0), (0, 0), (0, ic_pad - ic), (0, oc_pad - oc)))
    return wt.reshape(kh * kw * ic_pad, oc_pad)


def _im2col_nhwc(x, kh, kw, stride, pad):
    """x: (N, H, W, C) -> A: (N*OH*OW, KH*KW*C), feature order (kh, kw, c).

    Only slices + concat along the lane axis: no large transposes.
    """
    n, h, w, c = x.shape
    if pad:
        x = jnp.pad(x, ((0, 0), (pad, pad), (pad, pad), (0, 0)))
    oh = (h + 2 * pad - kh) // stride + 1
    ow = (w + 2 * pad - kw) // stride + 1
    cols = [x[:, i:i + stride * oh:stride, j:j + stride * ow:stride, :]
            for i in range(kh) for j in range(kw)]
    a = jnp.concatenate(cols, axis=-1)                          # (N, OH, OW, KH*KW*C)
    return a.reshape(n * oh * ow, kh * kw * c), oh, ow


def _conv_act(a, w_mat, bias_row, act):
    """Conv-as-matmul + bias + activation. a: (M, K), w_mat: (K, 128)."""
    m, k = a.shape
    oc = w_mat.shape[1]
    m_pad = _round_up(m, 8)
    if m_pad != m:                       # only the final (M=N) layer hits this
        a = jnp.pad(a, ((0, m_pad - m), (0, 0)))
    # 2 parallel M-tiles for the big layer (both v7x TensorCores busy),
    # otherwise a single full block (per-grid-step overhead dominates here).
    tm = m_pad // 2 if (m_pad >= 256 and (m_pad // 2) % 8 == 0) else m_pad
    out = pl.pallas_call(
        functools.partial(_conv_act_kernel, act=act),
        out_shape=jax.ShapeDtypeStruct((m_pad, oc), jnp.float32),
        grid=(m_pad // tm,),
        in_specs=[
            pl.BlockSpec((tm, k), lambda i: (i, 0)),
            pl.BlockSpec((k, oc), lambda i: (0, 0)),
            pl.BlockSpec((1, oc), lambda i: (0, 0)),
        ],
        out_specs=pl.BlockSpec((tm, oc), lambda i: (i, 0)),
        compiler_params=pltpu.CompilerParams(dimension_semantics=("parallel",)),
    )(a, w_mat, bias_row)
    return out[:m] if m_pad != m else out


def _conv_bn_leaky(a, w_mat, gamma_row, beta_row, eps=1e-5):
    """Fused conv + BN(batch stats) + LeakyReLU. Whole layer in one block."""
    m, k = a.shape
    oc = w_mat.shape[1]
    return pl.pallas_call(
        functools.partial(_conv_bn_leaky_kernel, eps=eps, inv_m=1.0 / m),
        out_shape=jax.ShapeDtypeStruct((m, oc), jnp.float32),
        grid=(1,),
        in_specs=[
            pl.BlockSpec((m, k), lambda i: (0, 0)),
            pl.BlockSpec((k, oc), lambda i: (0, 0)),
            pl.BlockSpec((1, oc), lambda i: (0, 0)),
            pl.BlockSpec((1, oc), lambda i: (0, 0)),
        ],
        out_specs=pl.BlockSpec((m, oc), lambda i: (0, 0)),
        compiler_params=pltpu.CompilerParams(dimension_semantics=("arbitrary",)),
    )(a, w_mat, gamma_row, beta_row)


# ----------------------------- Encoder forward ------------------------------ #

def aae_encoder_forward(x, params):
    """x: (N, C, H, W) NCHW (PyTorch layout). Returns (N, latent, 1, 1)."""
    n, c_in, _, _ = x.shape
    latent = params["b4"].shape[0]

    # NHWC once at the boundary; pad input channels 4 -> 8 so layer-1 K = 128.
    c_in_pad = 8
    xh = jnp.transpose(x, (0, 2, 3, 1))
    xh = jnp.pad(xh, ((0, 0), (0, 0), (0, 0), (0, c_in_pad - c_in)))

    # ----- layer 1: conv + leaky (fused epilogue) -----
    a1, oh1, ow1 = _im2col_nhwc(xh, 4, 4, 2, 1)                 # (N*16*16, 128)
    h1 = _conv_act(a1, _prep_weight(params["w1"], c_in_pad),
                   _pad_vec(params["b1"]), act="leaky")         # (M1, 128)

    # ----- layer 2: conv + BN(batch stats) + leaky, fully fused -----
    a2, oh2, ow2 = _im2col_nhwc(h1.reshape(n, oh1, ow1, LANE), 4, 4, 2, 1)
    h2 = _conv_bn_leaky(a2, _prep_weight(params["w2"], LANE),
                        _pad_vec(params["g2"]), _pad_vec(params["be2"]))

    # ----- layer 3: conv + BN(batch stats) + leaky, fully fused -----
    a3, oh3, ow3 = _im2col_nhwc(h2.reshape(n, oh2, ow2, LANE), 4, 4, 2, 1)
    h3 = _conv_bn_leaky(a3, _prep_weight(params["w3"], LANE),
                        _pad_vec(params["g3"]), _pad_vec(params["be3"]))

    # ----- layer 4: conv + tanh (fused epilogue) -----
    a4, oh4, ow4 = _im2col_nhwc(h3.reshape(n, oh3, ow3, LANE), 4, 4, 1, 0)
    h4 = _conv_act(a4, _prep_weight(params["w4"], LANE),
                   _pad_vec(params["b4"]), act="tanh")          # (N, 128)

    # Single slice back to the real latent width at the output boundary.
    return h4[:, :latent].reshape(n, oh4, ow4, latent).transpose(0, 3, 1, 2)


# ----------------------------- Reference (pure JAX) ------------------------- #

def _ref_conv(x, w, b, stride, pad):
    y = jax.lax.conv_general_dilated(
        x, w, (stride, stride), [(pad, pad), (pad, pad)],
        dimension_numbers=("NCHW", "OIHW", "NCHW"))
    return y + b.reshape(1, -1, 1, 1)


def _ref_bn_leaky(x, gamma, beta, eps=1e-5):
    mean = jnp.mean(x, axis=(0, 2, 3), keepdims=True)
    var = jnp.mean((x - mean) ** 2, axis=(0, 2, 3), keepdims=True)
    y = (x - mean) / jnp.sqrt(var + eps) * gamma.reshape(1, -1, 1, 1) + beta.reshape(1, -1, 1, 1)
    return jnp.where(y >= 0.0, y, 0.2 * y)


def aae_encoder_reference(x, p):
    h = _ref_conv(x, p["w1"], p["b1"], 2, 1)
    h = jnp.where(h >= 0.0, h, 0.2 * h)
    h = _ref_bn_leaky(_ref_conv(h, p["w2"], p["b2"], 2, 1), p["g2"], p["be2"])
    h = _ref_bn_leaky(_ref_conv(h, p["w3"], p["b3"], 2, 1), p["g3"], p["be3"])
    h = _ref_conv(h, p["w4"], p["b4"], 1, 0)
    return jnp.tanh(h)


# ----------------------------- Main ----------------------------------------- #

if __name__ == "__main__":
    # Small config: in_channels=4, latent_size=8, d=8; input is 32x32 so the
    # final 4x4/s1/p0 conv collapses spatial dims to 1x1 (as in DCGAN).
    N, C_IN, H, W = 2, 4, 32, 32
    D, LATENT = 8, 8
    c1, c2, c3 = D // 2, D * 2, D * 4                           # 4, 16, 32

    key = jax.random.PRNGKey(0)
    keys = jax.random.split(key, 9)
    params = {
        "w1": jax.random.normal(keys[0], (c1, C_IN, 4, 4), jnp.float32) * 0.1,
        "b1": jax.random.normal(keys[1], (c1,), jnp.float32) * 0.05,
        "w2": jax.random.normal(keys[2], (c2, c1, 4, 4), jnp.float32) * 0.1,
        "b2": jax.random.normal(keys[3], (c2,), jnp.float32) * 0.05,
        "g2": jnp.ones((c2,), jnp.float32),
        "be2": jnp.zeros((c2,), jnp.float32),
        "w3": jax.random.normal(keys[4], (c3, c2, 4, 4), jnp.float32) * 0.1,
        "b3": jax.random.normal(keys[5], (c3,), jnp.float32) * 0.05,
        "g3": jnp.ones((c3,), jnp.float32),
        "be3": jnp.zeros((c3,), jnp.float32),
        "w4": jax.random.normal(keys[6], (LATENT, c3, 4, 4), jnp.float32) * 0.1,
        "b4": jax.random.normal(keys[7], (LATENT,), jnp.float32) * 0.05,
    }
    x = jax.random.normal(keys[8], (N, C_IN, H, W), jnp.float32)

    out = jax.block_until_ready(aae_encoder_forward(x, params))
    ref = jax.block_until_ready(aae_encoder_reference(x, params))

    assert out.shape == (N, LATENT, 1, 1), out.shape
    assert jnp.all(jnp.isfinite(out))
    assert jnp.allclose(out, ref, atol=1e-3, rtol=1e-3)

    print("KERNEL_OK")
</pallas_src>

<mosaic_0001>
module attributes {stable_mosaic.version = 11 : i64} {
  func.func @_conv_act_kernel(%arg0: i32, %arg1: memref<256x128xf32, #tpu.memory_space<vmem>>, %arg2: memref<128x128xf32, #tpu.memory_space<vmem>>, %arg3: memref<1x128xf32, #tpu.memory_space<vmem>>, %arg4: memref<256x128xf32, #tpu.memory_space<vmem>>) attributes {dimension_semantics = [#tpu.dimension_semantics<parallel>], iteration_bounds = array<i64: 2>, scalar_prefetch = 0 : i64, scratch_operands = 0 : i64, tpu.core_type = #tpu.core_type<tc>, window_params = [{transform_indices = @transform_0, window_bounds = array<i64: 256, 128>}, {pipeline_mode = #tpu.pipeline_mode<synchronous>, transform_indices = @transform_1, window_bounds = array<i64: 128, 128>}, {pipeline_mode = #tpu.pipeline_mode<synchronous>, transform_indices = @transform_2, window_bounds = array<i64: 1, 128>}, {transform_indices = @transform_3, window_bounds = array<i64: 256, 128>}]} {
    %c0 = arith.constant 0 : index
    %c0_0 = arith.constant 0 : index
    %0 = vector.load %arg1[%c0, %c0_0] : memref<256x128xf32, #tpu.memory_space<vmem>>, vector<256x128xf32>
    %c0_1 = arith.constant 0 : index
    %c0_2 = arith.constant 0 : index
    %1 = vector.load %arg2[%c0_1, %c0_2] : memref<128x128xf32, #tpu.memory_space<vmem>>, vector<128x128xf32>
    %cst = arith.constant dense<0.000000e+00> : vector<256x128xf32>
    %2 = tpu.matmul %0, %1, %cst {dimension_numbers = #tpu.dot_dimension_numbers<[1], [0], [0], [1], [0, 0, 1, 1], [], []>} : vector<256x128xf32>, vector<128x128xf32>, vector<256x128xf32> -> vector<256x128xf32>
    %c0_3 = arith.constant 0 : index
    %c0_4 = arith.constant 0 : index
    %3 = vector.load %arg3[%c0_3, %c0_4] : memref<1x128xf32, #tpu.memory_space<vmem>>, vector<1x128xf32>
    %4 = vector.broadcast %3 : vector<1x128xf32> to vector<256x128xf32>
    %5 = arith.addf %2, %4 : vector<256x128xf32>
    %cst_5 = arith.constant 0.000000e+00 : f32
    %6 = vector.broadcast %cst_5 : f32 to vector<256x128xf32>
    %7 = arith.cmpf oge, %5, %6 : vector<256x128xf32>
    %cst_6 = arith.constant 2.000000e-01 : f32
    %8 = vector.broadcast %cst_6 : f32 to vector<256x128xf32>
    %9 = arith.mulf %8, %5 : vector<256x128xf32>
    %10 = arith.select %7, %5, %9 : vector<256x128xi1>, vector<256x128xf32>
    %c0_7 = arith.constant 0 : index
    %c0_8 = arith.constant 0 : index
    %11 = vector.load %arg4[%c0_7, %c0_8] : memref<256x128xf32, #tpu.memory_space<vmem>>, vector<256x128xf32>
    tpu.vector_store %arg4[%c0_7, %c0_8], %10 {strides = array<i32>} : memref<256x128xf32, #tpu.memory_space<vmem>>, vector<256x128xf32>,
    return
  }
  func.func @transform_0(%arg0: i32) -> (i32, i32) {
    %c0_i32 = arith.constant 0 : i32
    %c0_i32_0 = arith.constant 0 : i32
    return %arg0, %c0_i32 : i32, i32
  }
  func.func @transform_1(%arg0: i32) -> (i32, i32) {
    %c0_i32 = arith.constant 0 : i32
    %c0_i32_0 = arith.constant 0 : i32
    %c0_i32_1 = arith.constant 0 : i32
    return %c0_i32, %c0_i32_0 : i32, i32
  }
  func.func @transform_2(%arg0: i32) -> (i32, i32) {
    %c0_i32 = arith.constant 0 : i32
    %c0_i32_0 = arith.constant 0 : i32
    %c0_i32_1 = arith.constant 0 : i32
    return %c0_i32, %c0_i32_0 : i32, i32
  }
  func.func @transform_3(%arg0: i32) -> (i32, i32) {
    %c0_i32 = arith.constant 0 : i32
    %c0_i32_0 = arith.constant 0 : i32
    return %arg0, %c0_i32 : i32, i32
  }
}

</mosaic_0001>

<bundles_post_ra>
// kernel: tpu_custom_call.1
= control target key start
LH: loop header
LB: loop body
LE: loop exit
PB: predicated region body
PF: predicated region fallthrough
CT: control target
= control target key end

     0   :  { %8 = vsyncpa [#allocation3], 0  ;;  %s1441_s0 = inlined_call_operand.hbm [shape: f32[512,128], index: 0, kind: input, shape index: {}]   ;;  %s1442_s1 = inlined_call_operand.hbm [shape: f32[128,128], index: 1, kind: input, shape index: {}]   ;;  %s1443_s2 = inlined_call_operand.vmem [shape: f32[1,128], index: 2, kind: input, shape index: {}]   ;;  %s1444_s3 = inlined_call_operand.hbm [shape: f32[512,128], index: 3, kind: output, shape index: {}]  }
   0x1   :  { %10 = vsyncpa [#allocation3 + $0x1], 0 }
   0x2   :  { %11 = vsyncpa [#allocation6], 0 }
   0x3   :  { %12 = vsyncpa [#allocation4], 0 }
   0x4   :  { %14 = vsyncpa [#allocation4 + $0x1], 0  ;;  %s1124_s12 = smov 0   ;;  %s1126_s13 = smov 0  }
   0x5   :  { %s1128_s14 = smov 0   ;;  %s1130_s15 = smov 0  }
   0x6 LB: > { %s1145_s16 = sadd.s32 4294967295, %s1095_s15   ;;  %s711_s17 = sadd.s32 4294967294, %s1095_s15   ;;  %s1095_s15 = sphi %s1130_s15, %s1464_s15   ;;  %s1091_s14 = sphi %s1128_s14, %s1463_s14   ;;  %s1087_s13 = sphi %s1126_s13, %s1462_s13   ;;  %s1083_s12 = sphi %s1124_s12, %s1461_s12  }
   0x7   : > { %p40_p0 = scmp.ne.s32.totalorder %s1087_s13, %s1083_s12  ;;  %p1445_p1 = scmp.eq.s32.totalorder %s1145_s16, 0 }
   0x8   : > { %p112_p3 = scmp.eq.s32.totalorder %s711_s17, 1  ;;  %p712_p5 = scmp.ge.s32.totalorder %s1095_s15, 1 }
   0x9   : > { %p1154_p4 = por %p1445_p1, %p40_p0  ;;  %p119_p7 = scmp.lt.s32.totalorder %s1095_s15, 3 }
   0xa   : > { %p1159_p6 = por %p112_p3, %p40_p0  ;;  %s1097_s21 = smov [#allocation5]  }
   0xb   : > { %s1448_s18 = scalar_select %p1154_p4, 1, 0 }
   0xc   : > { %s1449_s19 = scalar_select %p1159_p6, 1, 0 }
   0xd   : > { %p1164_p8 = pnand %p712_p5, %p119_p7  ;;  %s131_s22 = sshll.u32 %s1097_s21, 4  ;;  %s1168_s22 = int_to_ptr.vmem [resolvable:$true] %s131_s22 }
   0xe   : > { %s1180_s24 = sadd.s32 1, %s1095_s15   ;;  %s27_s25 = sadd.s32 1, %s1091_s14 }
   0xf   : > { %s1450_s20 = scalar_select %p1164_p8, 1, 0 }
  0x10   : > { %p914_p9 = pneg %p1164_p8  ;;  %s24_s26 = ssub.s32 %s1095_s15, %s1180_s24 }
  0x11   : > { %s967_s29 = scalar_lea.hbm %s1442_s1, 2048 }
  0x12   : > { %p1175_p11 = pnand %p914_p9, %p1445_p1  ;;  %p968_p12 = scmp.ne.s32.totalorder %s1442_s1, %s967_s29 }
  0x13   : > { %p974_p5 = scmp.lt.u32.totalorder %s967_s29, %s1442_s1 }
  0x14   : > { %p969_p13 = pneg %p1175_p11 }
  0x16   : > { %p970_p0 = pnand %p969_p13, %p968_p12 }
  0x18   : > { %p971_p3 = pneg %p970_p0 }
  0x1a   : > { %p976_p7 = pnand %p974_p5, %p971_p3 }
  0x1c   : > { %979 = shalt.err (!%p976_p7)
}
  0x1d   : > { %s980_s7 = scalar_lea.vmem %s1168_s22, 2048  ;;  %p988_p2 = scmp.lt.s32.totalorder %s1168_s22, %s1168_s22 }
  0x1e   : > { %p981_p9 = scmp.ne.s32.totalorder %s1168_s22, %s980_s7  ;;  %p989_p6 = scmp.lt.s32.totalorder %s980_s7, %s980_s7 }
  0x20   : > { %p983_p10 = pnand %p981_p9, %p969_p13  ;;  %p990_p4 = por %p989_p6, %p988_p2 }
  0x22   : > { %p984_p1 = pneg %p983_p10 }
  0x24   : > { %p991_p8 = pnand %p990_p4, %p984_p1 }
  0x26   : > { %994 = shalt.err (!%p991_p8)
}
  0x27   : > { %s1098_s8 = smov 128   ;;  %s1099_s9 = smov 8  }
  0x28   : > { %917 = dma.hbm_to_vmem [thread:$0]  (!%p1175_p11), %s1442_s1, 2048, %s1168_s22, [#allocation6], %s1098_s8, %s1098_s8, %s1099_s9  }
  0x29   : > { %p25_p1 = scmp.eq.s32.totalorder %s24_s26, 0  ;;  %p34_p2 = scmp.ne.s32.totalorder %s1091_s14, %s1087_s13 }
  0x2a   : > { %p35_p4 = scmp.eq.s32.totalorder %s1095_s15, 0  ;;  %p927_p6 = scmp.lt.s32.totalorder %s1095_s15, 2 }
  0x2b   : > { %s1214_s17 = scalar_select %p25_p1, %s1091_s14, %s27_s25  }
  0x2c   : > { %p36_p8 = por %p35_p4, %p34_p2  ;;  %p1452_p10 = scmp.eq.s32.totalorder %s1145_s16, 1 }
  0x2d   : > { %s148_s23 = sand.u32 1, %s1091_s14   ;;  %s728_s27 = sshll.u32 %s1095_s15, 12 }
  0x2e   : > { %p1218_p12 = por %p1452_p10, %p34_p2  ;;  %s715_s28 = sshll.u32 %s148_s23, 8 }
  0x2f   : > { %s1227_s4 = scalar_lea.hbm %s1441_s0, %s728_s27  ;;  %s152_s22 = scalar_lea.vmem [#allocation2], %s715_s28 }
  0x30   : > { %s159_s25 = sshll.u32 %s152_s22, 4  ;;  %p1229_p11 = pnand %p927_p6, %p36_p8  ;;  %s1233_s25 = int_to_ptr.vmem [resolvable:$true] %s159_s25 }
  0x31   : > { %s1235_s5 = scalar_lea.sflag [#allocation3], %s148_s23  ;;  %s995_s6 = scalar_lea.hbm %s1227_s4, 4096 }
  0x32   : > { %p996_p13 = scmp.ne.s32.totalorder %s1227_s4, %s995_s6  ;;  %p997_p0 = pneg %p1229_p11 }
  0x33   : > { %s1000_s11 = scalar_lea.hbm %s1441_s0, 8192  ;;  %p1001_p7 = scmp.lt.u32.totalorder %s1227_s4, %s1441_s0 }
  0x34   : > { %p998_p3 = pnand %p997_p0, %p996_p13  ;;  %p1002_p9 = scmp.lt.u32.totalorder %s1000_s11, %s995_s6 }
  0x35   : > { %p1004_p2 = scmp.lt.u32.totalorder %s995_s6, %s1227_s4 }
  0x36   : > { %p999_p5 = pneg %p998_p3  ;;  %p1003_p1 = por %p1002_p9, %p1001_p7 }
  0x38   : > { %p1005_p4 = por %p1004_p2, %p1003_p1 }
  0x3a   : > { %p1006_p6 = pnand %p1005_p4, %p999_p5 }
  0x3c   : > { %1009 = shalt.err (!%p1006_p6)
}
  0x3d   : > { %s1010_s23 = scalar_lea.vmem %s1233_s25, 4096  ;;  %s1100_s29 = smov [#allocation2]  }
  0x3e   : > { %p1011_p8 = scmp.ne.s32.totalorder %s1233_s25, %s1010_s23  ;;  %s1015_s30 = sshll.u32 %s1100_s29, 4  ;;  %s1016_s30 = int_to_ptr.vmem [resolvable:$false] %s1015_s30 }
  0x3f   : > { %s1017_s22 = scalar_lea.vmem %s1016_s30, 8192  ;;  %p1018_p3 = scmp.lt.s32.totalorder %s1233_s25, %s1016_s30 }
  0x40   : > { %p1013_p10 = pnand %p1011_p8, %p997_p0  ;;  %p1019_p7 = scmp.lt.s32.totalorder %s1017_s22, %s1010_s23 }
  0x42   : > { %p1014_p13 = pneg %p1013_p10  ;;  %p1020_p9 = por %p1019_p7, %p1018_p3 }
  0x44   : > { %p1021_p1 = pnand %p1020_p9, %p1014_p13 }
  0x46   : > { %1024 = shalt.err (!%p1021_p1)
}
  0x47   : > { %921 = dma.hbm_to_vmem [thread:$0]  (!%p1229_p11), %s1227_s4, 4096, %s1233_s25, %s1235_s5, %s1098_s8, %s1098_s8, %s1099_s9  }
  0x48   : > { %p1455_p0 = scmp.ne.s32.totalorder %s1450_s20, 0 }
  0x49   : > { %s1269_s6 = sand.u32 (!%p1455_p0), 1, %s1087_s13   ;;  %p1456_p5 = scmp.ne.s32.totalorder (!%p1455_p0), %s1448_s18, 0 }
  0x4a   : > { %171 = sbr.rel (%p1455_p0) target bundleno = 384 (0x180), region = 32  ;;  %s719_s7 = sshll.u32 (!%p1455_p0), %s1269_s6, 8 }
  0x4b   : > { %s174_s10 = scalar_lea.sflag (!%p1455_p0), [#allocation3], %s1269_s6  ;;  %s1275_s26 = scalar_lea.vmem (!%p1455_p0), [#allocation2], %s719_s7 }
  0x51   : > { %1070 = dma.done.wait (%p1456_p5), %s174_s10, 4096  }
  0x52   : > { %1072 = vsyncadd (%p1456_p5), %s174_s10, 4294963200  ;;  %p1457_p11 = scmp.eq.s32.totalorder %s1145_s16, 0 }
  0x54   : > { %1074 = dma.done.wait (%p1457_p11), [#allocation6], 2048   ;;  %p1458_p2 = pmov %p1457_p11 }
  0x55   : > { %v238_v0 = vld [vmem:[#allocation5] sm:$0xff]  ;;  %v239_v1 = vld [vmem:[#allocation5 + $0x8] sm:$0xff]  ;;  %v240_v2 = vld [vmem:[#allocation5 + $0x10] sm:$0xff]  ;;  %s1328_s8 = scalar_lea.vmem [#allocation7], %s719_s7  ;;  %s729_s9 = sshll.u32 %s1145_s16, 12 }
  0x56   : > { %1076 = vsyncadd (%p1458_p2), [#allocation6], 4294965248  ;;  %v858_v3 = vpack.c.bf16 %v239_v1, %v238_v0  ;;  %v241_v4 = vld [vmem:[#allocation5 + $0x18] sm:$0xff]  ;;  %v242_v6 = vld [vmem:[#allocation5 + $0x20] sm:$0xff]  ;;  %s628_s4 = sshll.u32 %s1328_s8, 4  ;;  %s1391_s5 = scalar_lea.hbm %s1444_s3, %s729_s9  ;;  %s1393_s4 = int_to_ptr.vmem [resolvable:$true] %s628_s4 }
  0x57   : > { %v862_v5 = vpack.c.bf16 %v241_v4, %v240_v2  ;;  %v243_v7 = vld [vmem:[#allocation5 + $0x28] sm:$0xff]  ;;  %v206_v9 = vld [vmem:[%s1275_s26] sm:$0xff]  ;;  %v244_v11 = vld [vmem:[#allocation5 + $0x30] sm:$0xff]  ;;  %s615_s11 = scalar_lea.sflag [#allocation4], %s1269_s6  ;;  %s1025_s27 = scalar_lea.vmem %s1393_s4, 4096 }
  0x58   : > { %859 = vmatprep.subr.bf16.mxu0 %v858_v3  ;;  %890 = vmatprep.subr.bf16.mxu1 %v858_v3  ;;  %v866_v8 = vpack.c.bf16 %v243_v7, %v242_v6  ;;  %v222_v10 = vld [vmem:[%s1275_s26 + $0x80] sm:$0xff]  ;;  %v245_v12 = vld [vmem:[#allocation5 + $0x38] sm:$0xff]  ;;  %v247_v15 = vld [vmem:[#allocation5 + $0x48] sm:$0xff]  ;;  %p1026_p4 = scmp.ne.s32.totalorder %s1393_s4, %s1025_s27  ;;  %s1101_s28 = smov [#allocation7]  }
  0x59   : > { %861 = vmatpush3.bf16.msra.mxu0 %v858_v3  ;;  %898 = vmatpush3.bf16.msra.mxu1 %v858_v3  ;;  %v870_v13 = vpack.c.bf16 %v245_v12, %v244_v11  ;;  %v246_v14 = vld [vmem:[#allocation5 + $0x40] sm:$0xff]  ;;  %v248_v17 = vld [vmem:[#allocation5 + $0x50] sm:$0xff]  ;;  %v249_v18 = vld [vmem:[#allocation5 + $0x58] sm:$0xff]  ;;  %s1029_s23 = sshll.u32 %s1101_s28, 4  ;;  %s1030_s23 = int_to_ptr.vmem [resolvable:$false] %s1029_s23 }
  0x5a   : > { %863 = vmatprep.subr.bf16.mxu0 %v862_v5  ;;  %891 = vmatprep.subr.bf16.mxu1 %v862_v5  ;;  %v874_v16 = vpack.c.bf16 %v247_v15, %v246_v14  ;;  %v878_v19 = vpack.c.bf16 %v249_v18, %v248_v17  ;;  %v250_v20 = vld [vmem:[#allocation5 + $0x60] sm:$0xff]  ;;  %v251_v21 = vld [vmem:[#allocation5 + $0x68] sm:$0xff]  ;;  %v252_v23 = vld [vmem:[#allocation5 + $0x70] sm:$0xff]  ;;  %p1027_p6 = pnand %p1026_p4, %p1218_p12  ;;  %s1031_s29 = scalar_lea.vmem %s1030_s23, 8192 }
  0x5b   : > { %810 = vmatprep.mubr.f32.mxu0 %v206_v9  ;;  %834 = vmatprep.mubr.f32.mxu1 %v222_v10  ;;  %v882_v22 = vpack.c.bf16 %v251_v21, %v250_v20  ;;  %v253_v24 = vld [vmem:[#allocation5 + $0x78] sm:$0xff]  ;;  %v207_v26 = vld [vmem:[%s1275_s26 + $0x8] sm:$0xff]  ;;  %v208_v28 = vld [vmem:[%s1275_s26 + $0x10] sm:$0xff]  ;;  %p1032_p10 = scmp.lt.s32.totalorder %s1393_s4, %s1030_s23  ;;  %p1033_p13 = scmp.lt.s32.totalorder %s1031_s29, %s1025_s27 }
  0x5c   : > { %v886_v25 = vpack.c.bf16 %v253_v24, %v252_v23  ;;  %v223_v27 = vld [vmem:[%s1275_s26 + $0x88] sm:$0xff]  ;;  %v224_v29 = vld [vmem:[%s1275_s26 + $0x90] sm:$0xff]  ;;  %v209_v30 = vld [vmem:[%s1275_s26 + $0x18] sm:$0xff]  ;;  %p1028_p8 = pneg %p1027_p6 }
  0x5d   : > { %865 = vmatpush3.bf16.msra.mxu0 %v862_v5  ;;  %899 = vmatpush3.bf16.msra.mxu1 %v862_v5  ;;  %v225_v31 = vld [vmem:[%s1275_s26 + $0x98] sm:$0xff]  ;;  %v210_v32 = vld [vmem:[%s1275_s26 + $0x20] sm:$0xff]  ;;  %v211_v34 = vld [vmem:[%s1275_s26 + $0x28] sm:$0xff]  ;;  %p1034_p3 = por %p1033_p13, %p1032_p10 }
  0x5e   : > { %867 = vmatprep.subr.bf16.mxu0 %v866_v8  ;;  %892 = vmatprep.subr.bf16.mxu1 %v866_v8  ;;  %v226_v33 = vld [vmem:[%s1275_s26 + $0xa0] sm:$0xff]  ;;  %v227_v35 = vld [vmem:[%s1275_s26 + $0xa8] sm:$0xff]  ;;  %v212_v36 = vld [vmem:[%s1275_s26 + $0x30] sm:$0xff] }
  0x5f   : > { %v228_v37 = vld [vmem:[%s1275_s26 + $0xb0] sm:$0xff]  ;;  %v213_v38 = vld [vmem:[%s1275_s26 + $0x38] sm:$0xff]  ;;  %v214_v40 = vld [vmem:[%s1275_s26 + $0x40] sm:$0xff]  ;;  %p1035_p7 = pnand %p1034_p3, %p1028_p8 }
  0x60   : > { %v229_v39 = vld [vmem:[%s1275_s26 + $0xb8] sm:$0xff]  ;;  %v230_v41 = vld [vmem:[%s1275_s26 + $0xc0] sm:$0xff]  ;;  %v215_v42 = vld [vmem:[%s1275_s26 + $0x48] sm:$0xff] }
  0x61   : > { %869 = vmatpush3.bf16.msra.mxu0 %v866_v8  ;;  %900 = vmatpush3.bf16.msra.mxu1 %v866_v8  ;;  %v231_v43 = vld [vmem:[%s1275_s26 + $0xc8] sm:$0xff]  ;;  %v216_v44 = vld [vmem:[%s1275_s26 + $0x50] sm:$0xff]  ;;  %v217_v46 = vld [vmem:[%s1275_s26 + $0x58] sm:$0xff] }
  0x62   : > { %871 = vmatprep.subr.bf16.mxu0 %v870_v13  ;;  %893 = vmatprep.subr.bf16.mxu1 %v870_v13  ;;  %v232_v45 = vld [vmem:[%s1275_s26 + $0xd0] sm:$0xff]  ;;  %v233_v47 = vld [vmem:[%s1275_s26 + $0xd8] sm:$0xff]  ;;  %v218_v48 = vld [vmem:[%s1275_s26 + $0x60] sm:$0xff] }
  0x63   : > { %v234_v49 = vld [vmem:[%s1275_s26 + $0xe0] sm:$0xff]  ;;  %v219_v50 = vld [vmem:[%s1275_s26 + $0x68] sm:$0xff]  ;;  %v220_v52 = vld [vmem:[%s1275_s26 + $0x70] sm:$0xff] }
  0x64   : > { %v235_v51 = vld [vmem:[%s1275_s26 + $0xe8] sm:$0xff]  ;;  %v236_v53 = vld [vmem:[%s1275_s26 + $0xf0] sm:$0xff]  ;;  %v221_v54 = vld [vmem:[%s1275_s26 + $0x78] sm:$0xff] }
  0x65   : > { %873 = vmatpush3.bf16.msra.mxu0 %v870_v13  ;;  %901 = vmatpush3.bf16.msra.mxu1 %v870_v13  ;;  %v237_v55 = vld [vmem:[%s1275_s26 + $0xf8] sm:$0xff]  ;;  %v1320_v56 = vld [vmem:[%s1443_s2] ss:$0 sm:$0xff] }
  0x66   : > { %875 = vmatprep.subr.bf16.mxu0 %v874_v16  ;;  %894 = vmatprep.subr.bf16.mxu1 %v874_v16 }
  0x69   : > { %877 = vmatpush3.bf16.msra.mxu0 %v874_v16  ;;  %902 = vmatpush3.bf16.msra.mxu1 %v874_v16 }
  0x6a   : > { %879 = vmatprep.subr.bf16.mxu0 %v878_v19  ;;  %895 = vmatprep.subr.bf16.mxu1 %v878_v19 }
  0x6d   : > { %881 = vmatpush3.bf16.msra.mxu0 %v878_v19  ;;  %903 = vmatpush3.bf16.msra.mxu1 %v878_v19 }
  0x6e   : > { %883 = vmatprep.subr.bf16.mxu0 %v882_v22  ;;  %896 = vmatprep.subr.bf16.mxu1 %v882_v22 }
  0x71   : > { %885 = vmatpush3.bf16.msra.mxu0 %v882_v22  ;;  %904 = vmatpush3.bf16.msra.mxu1 %v882_v22 }
  0x72   : > { %887 = vmatprep.subr.bf16.mxu0 %v886_v25  ;;  %897 = vmatprep.subr.bf16.mxu1 %v886_v25 }
  0x75   : > { %889 = vmatpush3.bf16.msra.mxu0 %v886_v25  ;;  %905 = vmatpush3.bf16.msra.mxu1 %v886_v25 }
  0x78   : > { %811 = vmatmul.mubr.f32.vlgmr.msra.gmra.mrb[0].mxu0 %v207_v26  ;;  %835 = vmatmul.mubr.f32.vlgmr.msra.gmra.mrb[0].mxu1 %v223_v27 }
  0x79   : > { %813 = vmatprep.mubr.f32.mxu0 %v208_v28  ;;  %837 = vmatprep.mubr.f32.mxu1 %v224_v29 }
  0x7c   : > { %814 = vmatmul.mubr.f32.gmra.mrb[2].mxu0 %v209_v30  ;;  %838 = vmatmul.mubr.f32.gmra.mrb[2].mxu1 %v225_v31 }
  0x7d   : > { %816 = vmatprep.mubr.f32.mxu0 %v210_v32  ;;  %840 = vmatprep.mubr.f32.mxu1 %v226_v33 }
  0x80   : > { %817 = vmatmul.mubr.f32.gmra.mrb[4].mxu0 %v211_v34  ;;  %841 = vmatmul.mubr.f32.gmra.mrb[4].mxu1 %v227_v35 }
  0x81   : > { %819 = vmatprep.mubr.f32.mxu0 %v212_v36  ;;  %843 = vmatprep.mubr.f32.mxu1 %v228_v37 }
  0x84   : > { %820 = vmatmul.mubr.f32.gmra.mrb[6].mxu0 %v213_v38  ;;  %844 = vmatmul.mubr.f32.gmra.mrb[6].mxu1 %v229_v39 }
  0x85   : > { %822 = vmatprep.mubr.f32.mxu0 %v214_v40  ;;  %846 = vmatprep.mubr.f32.mxu1 %v230_v41 }
  0x88   : > { %823 = vmatmul.mubr.f32.gmra.mrb[8].mxu0 %v215_v42  ;;  %847 = vmatmul.mubr.f32.gmra.mrb[8].mxu1 %v231_v43 }
  0x89   : > { %825 = vmatprep.mubr.f32.mxu0 %v216_v44  ;;  %849 = vmatprep.mubr.f32.mxu1 %v232_v45 }
  0x8c   : > { %826 = vmatmul.mubr.f32.gmra.mrb[10].mxu0 %v217_v46  ;;  %850 = vmatmul.mubr.f32.gmra.mrb[10].mxu1 %v233_v47 }
  0x8d   : > { %828 = vmatprep.mubr.f32.mxu0 %v218_v48  ;;  %852 = vmatprep.mubr.f32.mxu1 %v234_v49 }
  0x90   : > { %829 = vmatmul.mubr.f32.gmra.mrb[12].mxu0 %v219_v50  ;;  %853 = vmatmul.mubr.f32.gmra.mrb[12].mxu1 %v235_v51 }
  0x91   : > { %831 = vmatprep.mubr.f32.mxu0 %v220_v52  ;;  %855 = vmatprep.mubr.f32.mxu1 %v236_v53 }
  0x94   : > { %832 = vmatmul.mubr.f32.gmra.mrb[14].mxu0 %v221_v54  ;;  %856 = vmatmul.mubr.f32.gmra.mrb[14].mxu1 %v237_v55 }
 0x14b   : > { %v812_v57 = vpop.f32.mrb[0].mxu0  ;;  %v836_v58 = vpop.f32.mrb[0].mxu1 }
 0x14c   : > { %v333_v59 = vadd.f32 %v812_v57, %v1320_v56  ;;  %v413_v60 = vadd.f32 %v836_v58, %v1320_v56  ;;  %v327_v61 = vpop.f32.mrb[1].mxu0  ;;  %v407_v62 = vpop.f32.mrb[1].mxu1 }
 0x14d   : > { %v328_v63 = vadd.f32 %v1320_v56, %v327_v61  ;;  %v408_v0 = vadd.f32 %v1320_v56, %v407_v62 }
 0x14e   : > { %vm487_vm0 = vcmp.ge.f32.partialorder %v333_v59, 0.0  ;;  %v519_v1 = vmul.f32 0.2, %v333_v59  ;;  %vm503_vm1 = vcmp.ge.f32.partialorder %v413_v60, 0.0  ;;  %v535_v2 = vmul.f32 0.2, %v413_v60 }
 0x14f   : > { %vm486_vm2 = vcmp.ge.f32.partialorder %v328_v63, 0.0  ;;  %v518_v3 = vmul.f32 0.2, %v328_v63  ;;  %vm502_vm3 = vcmp.ge.f32.partialorder %v408_v0, 0.0  ;;  %v534_v4 = vmul.f32 0.2, %v408_v0 }
 0x150   : > { %v551_v5 = vsel %vm487_vm0, %v333_v59, %v519_v1  ;;  %v567_v6 = vsel %vm503_vm1, %v413_v60, %v535_v2  ;;  %v815_v7 = vpop.f32.mrb[2].mxu0  ;;  %v839_v8 = vpop.f32.mrb[2].mxu1 }
 0x151   : > { %583 = vst [vmem:[%s1328_s8 + $0x8] sm:$0xff] %v551_v5  ;;  %599 = vst [vmem:[%s1328_s8 + $0x88] sm:$0xff] %v567_v6  ;;  %v550_v9 = vsel %vm486_vm2, %v328_v63, %v518_v3  ;;  %v566_v10 = vsel %vm502_vm3, %v408_v0, %v534_v4  ;;  %v343_v11 = vadd.f32 %v815_v7, %v1320_v56  ;;  %v337_v13 = vpop.f32.mrb[3].mxu0  ;;  %v417_v14 = vpop.f32.mrb[3].mxu1 }
 0x152   : > { %v423_v12 = vadd.f32 %v839_v8, %v1320_v56  ;;  %582 = vst [vmem:[%s1328_s8] sm:$0xff] %v550_v9  ;;  %598 = vst [vmem:[%s1328_s8 + $0x80] sm:$0xff] %v566_v10  ;;  %v338_v15 = vadd.f32 %v1320_v56, %v337_v13  ;;  %v418_v16 = vadd.f32 %v1320_v56, %v417_v14 }
 0x153   : > { %vm489_vm4 = vcmp.ge.f32.partialorder %v343_v11, 0.0  ;;  %v521_v17 = vmul.f32 0.2, %v343_v11  ;;  %v818_v23 = vpop.f32.mrb[4].mxu0  ;;  %v842_v24 = vpop.f32.mrb[4].mxu1 }
 0x154   : > { %vm505_vm5 = vcmp.ge.f32.partialorder %v423_v12, 0.0  ;;  %v537_v18 = vmul.f32 0.2, %v423_v12  ;;  %vm488_vm6 = vcmp.ge.f32.partialorder %v338_v15, 0.0  ;;  %v520_v19 = vmul.f32 0.2, %v338_v15 }
 0x155   : > { %vm504_vm7 = vcmp.ge.f32.partialorder %v418_v16, 0.0  ;;  %v536_v20 = vmul.f32 0.2, %v418_v16  ;;  %v553_v21 = vsel %vm489_vm4, %v343_v11, %v521_v17  ;;  %v353_v27 = vadd.f32 %v818_v23, %v1320_v56  ;;  %v347_v29 = vpop.f32.mrb[5].mxu0  ;;  %v427_v30 = vpop.f32.mrb[5].mxu1 }
 0x156   : > { %v569_v22 = vsel %vm505_vm5, %v423_v12, %v537_v18  ;;  %585 = vst [vmem:[%s1328_s8 + $0x18] sm:$0xff] %v553_v21  ;;  %v552_v25 = vsel %vm488_vm6, %v338_v15, %v520_v19  ;;  %v433_v28 = vadd.f32 %v842_v24, %v1320_v56  ;;  %v348_v31 = vadd.f32 %v1320_v56, %v347_v29 }
 0x157   : > { %601 = vst [vmem:[%s1328_s8 + $0x98] sm:$0xff] %v569_v22  ;;  %v568_v26 = vsel %vm504_vm7, %v418_v16, %v536_v20  ;;  %584 = vst [vmem:[%s1328_s8 + $0x10] sm:$0xff] %v552_v25  ;;  %v428_v32 = vadd.f32 %v1320_v56, %v427_v30  ;;  %v821_v33 = vpop.f32.mrb[6].mxu0  ;;  %v845_v34 = vpop.f32.mrb[6].mxu1  ;;  %vm491_vm8 = vcmp.ge.f32.partialorder %v353_v27, 0.0 }
 0x158   : > { %600 = vst [vmem:[%s1328_s8 + $0x90] sm:$0xff] %v568_v26  ;;  %v523_v35 = vmul.f32 0.2, %v353_v27  ;;  %vm507_vm9 = vcmp.ge.f32.partialorder %v433_v28, 0.0  ;;  %v539_v36 = vmul.f32 0.2, %v433_v28  ;;  %v363_v41 = vadd.f32 %v821_v33, %v1320_v56 }
 0x159   : > { %vm490_vm10 = vcmp.ge.f32.partialorder %v348_v31, 0.0  ;;  %v522_v37 = vmul.f32 0.2, %v348_v31  ;;  %vm506_vm11 = vcmp.ge.f32.partialorder %v428_v32, 0.0  ;;  %v538_v38 = vmul.f32 0.2, %v428_v32 }
 0x15a   : > { %v555_v39 = vsel %vm491_vm8, %v353_v27, %v523_v35  ;;  %v571_v40 = vsel %vm507_vm9, %v433_v28, %v539_v36  ;;  %v443_v42 = vadd.f32 %v845_v34, %v1320_v56  ;;  %v357_v43 = vpop.f32.mrb[7].mxu0  ;;  %v437_v44 = vpop.f32.mrb[7].mxu1  ;;  %vm493_vm12 = vcmp.ge.f32.partialorder %v363_v41, 0.0 }
 0x15b   : > { %587 = vst [vmem:[%s1328_s8 + $0x28] sm:$0xff] %v555_v39  ;;  %603 = vst [vmem:[%s1328_s8 + $0xa8] sm:$0xff] %v571_v40  ;;  %v554_v45 = vsel %vm490_vm10, %v348_v31, %v522_v37  ;;  %v570_v46 = vsel %vm506_vm11, %v428_v32, %v538_v38  ;;  %v358_v47 = vadd.f32 %v1320_v56, %v357_v43  ;;  %v824_v49 = vpop.f32.mrb[8].mxu0  ;;  %v848_v50 = vpop.f32.mrb[8].mxu1  ;;  %v525_v51 = vmul.f32 0.2, %v363_v41 }
 0x15c   : > { %v438_v48 = vadd.f32 %v1320_v56, %v437_v44  ;;  %586 = vst [vmem:[%s1328_s8 + $0x20] sm:$0xff] %v554_v45  ;;  %602 = vst [vmem:[%s1328_s8 + $0xa0] sm:$0xff] %v570_v46  ;;  %vm509_vm13 = vcmp.ge.f32.partialorder %v443_v42, 0.0  ;;  %v541_v52 = vmul.f32 0.2, %v443_v42  ;;  %v373_v58 = vadd.f32 %v824_v49, %v1320_v56  ;;  %v367_v60 = vpop.f32.mrb[9].mxu0 }
 0x15d   : > { %vm492_vm14 = vcmp.ge.f32.partialorder %v358_v47, 0.0  ;;  %v524_v53 = vmul.f32 0.2, %v358_v47  ;;  %v557_v55 = vsel %vm493_vm12, %v363_v41, %v525_v51  ;;  %v453_v59 = vadd.f32 %v848_v50, %v1320_v56  ;;  %v447_v61 = vpop.f32.mrb[9].mxu1 }
 0x15e   : > { %vm508_vm15 = vcmp.ge.f32.partialorder %v438_v48, 0.0  ;;  %v540_v54 = vmul.f32 0.2, %v438_v48  ;;  %v573_v57 = vsel %vm509_vm13, %v443_v42, %v541_v52  ;;  %589 = vst [vmem:[%s1328_s8 + $0x38] sm:$0xff] %v557_v55  ;;  %v368_v0 = vadd.f32 %v1320_v56, %v367_v60 }
 0x15f   : > { %605 = vst [vmem:[%s1328_s8 + $0xb8] sm:$0xff] %v573_v57  ;;  %v556_v62 = vsel %vm492_vm14, %v358_v47, %v524_v53  ;;  %v448_v1 = vadd.f32 %v1320_v56, %v447_v61  ;;  %v827_v2 = vpop.f32.mrb[10].mxu0  ;;  %v851_v3 = vpop.f32.mrb[10].mxu1  ;;  %vm495_vm0 = vcmp.ge.f32.partialorder %v373_v58, 0.0  ;;  %v527_v4 = vmul.f32 0.2, %v373_v58 }
 0x160   : > { %v572_v63 = vsel %vm508_vm15, %v438_v48, %v540_v54  ;;  %588 = vst [vmem:[%s1328_s8 + $0x30] sm:$0xff] %v556_v62  ;;  %vm511_vm1 = vcmp.ge.f32.partialorder %v453_v59, 0.0  ;;  %v543_v5 = vmul.f32 0.2, %v453_v59  ;;  %vm494_vm2 = vcmp.ge.f32.partialorder %v368_v0, 0.0  ;;  %v377_v12 = vpop.f32.mrb[11].mxu0 }
 0x161   : > { %604 = vst [vmem:[%s1328_s8 + $0xb0] sm:$0xff] %v572_v63  ;;  %v526_v6 = vmul.f32 0.2, %v368_v0  ;;  %vm510_vm3 = vcmp.ge.f32.partialorder %v448_v1, 0.0  ;;  %v542_v7 = vmul.f32 0.2, %v448_v1  ;;  %v559_v8 = vsel %vm495_vm0, %v373_v58, %v527_v4 }
 0x162   : > { %v575_v9 = vsel %vm511_vm1, %v453_v59, %v543_v5  ;;  %v383_v10 = vadd.f32 %v827_v2, %v1320_v56  ;;  %v463_v11 = vadd.f32 %v851_v3, %v1320_v56  ;;  %v457_v13 = vpop.f32.mrb[11].mxu1  ;;  %591 = vst [vmem:[%s1328_s8 + $0x48] sm:$0xff] %v559_v8  ;;  %v378_v16 = vadd.f32 %v1320_v56, %v377_v12 }
 0x163   : > { %607 = vst [vmem:[%s1328_s8 + $0xc8] sm:$0xff] %v575_v9  ;;  %v558_v14 = vsel %vm494_vm2, %v368_v0, %v526_v6  ;;  %v574_v15 = vsel %vm510_vm3, %v448_v1, %v542_v7  ;;  %v458_v17 = vadd.f32 %v1320_v56, %v457_v13  ;;  %v830_v18 = vpop.f32.mrb[12].mxu0  ;;  %v854_v19 = vpop.f32.mrb[12].mxu1 }
 0x164   : > { %590 = vst [vmem:[%s1328_s8 + $0x40] sm:$0xff] %v558_v14  ;;  %606 = vst [vmem:[%s1328_s8 + $0xc0] sm:$0xff] %v574_v15  ;;  %vm497_vm4 = vcmp.ge.f32.partialorder %v383_v10, 0.0  ;;  %v529_v20 = vmul.f32 0.2, %v383_v10  ;;  %vm513_vm5 = vcmp.ge.f32.partialorder %v463_v11, 0.0  ;;  %v393_v26 = vadd.f32 %v830_v18, %v1320_v56 }
 0x165   : > { %v545_v21 = vmul.f32 0.2, %v463_v11  ;;  %vm496_vm6 = vcmp.ge.f32.partialorder %v378_v16, 0.0  ;;  %v528_v22 = vmul.f32 0.2, %v378_v16  ;;  %vm512_vm7 = vcmp.ge.f32.partialorder %v458_v17, 0.0 }
 0x166   : > { %v544_v23 = vmul.f32 0.2, %v458_v17  ;;  %v561_v24 = vsel %vm497_vm4, %v383_v10, %v529_v20  ;;  %v473_v27 = vadd.f32 %v854_v19, %v1320_v56  ;;  %v387_v28 = vpop.f32.mrb[13].mxu0  ;;  %v467_v29 = vpop.f32.mrb[13].mxu1  ;;  %vm499_vm8 = vcmp.ge.f32.partialorder %v393_v26, 0.0 }
 0x167   : > { %v577_v25 = vsel %vm513_vm5, %v463_v11, %v545_v21  ;;  %593 = vst [vmem:[%s1328_s8 + $0x58] sm:$0xff] %v561_v24  ;;  %v560_v30 = vsel %vm496_vm6, %v378_v16, %v528_v22  ;;  %v388_v32 = vadd.f32 %v1320_v56, %v387_v28  ;;  %v468_v33 = vadd.f32 %v1320_v56, %v467_v29  ;;  %v833_v34 = vpop.f32.mrb[14].mxu0  ;;  %v857_v35 = vpop.f32.mrb[14].mxu1 }
 0x168   : > { %609 = vst [vmem:[%s1328_s8 + $0xd8] sm:$0xff] %v577_v25  ;;  %v576_v31 = vsel %vm512_vm7, %v458_v17, %v544_v23  ;;  %592 = vst [vmem:[%s1328_s8 + $0x50] sm:$0xff] %v560_v30  ;;  %v531_v36 = vmul.f32 0.2, %v393_v26  ;;  %vm515_vm9 = vcmp.ge.f32.partialorder %v473_v27, 0.0  ;;  %v403_v42 = vadd.f32 %v833_v34, %v1320_v56  ;;  %v397_v44 = vpop.f32.mrb[15].mxu0 }
 0x169   : > { %608 = vst [vmem:[%s1328_s8 + $0xd0] sm:$0xff] %v576_v31  ;;  %v547_v37 = vmul.f32 0.2, %v473_v27  ;;  %vm498_vm10 = vcmp.ge.f32.partialorder %v388_v32, 0.0  ;;  %v530_v38 = vmul.f32 0.2, %v388_v32  ;;  %v483_v43 = vadd.f32 %v857_v35, %v1320_v56 }
 0x16a   : > { %vm514_vm11 = vcmp.ge.f32.partialorder %v468_v33, 0.0  ;;  %v546_v39 = vmul.f32 0.2, %v468_v33  ;;  %v563_v40 = vsel %vm499_vm8, %v393_v26, %v531_v36  ;;  %v477_v45 = vpop.f32.mrb[15].mxu1  ;;  %v398_v48 = vadd.f32 %v1320_v56, %v397_v44 }
 0x16b   : > { %v579_v41 = vsel %vm515_vm9, %v473_v27, %v547_v37  ;;  %595 = vst [vmem:[%s1328_s8 + $0x68] sm:$0xff] %v563_v40  ;;  %v562_v46 = vsel %vm498_vm10, %v388_v32, %v530_v38  ;;  %v478_v49 = vadd.f32 %v1320_v56, %v477_v45  ;;  %vm501_vm12 = vcmp.ge.f32.partialorder %v403_v42, 0.0 }
 0x16c   : > { %611 = vst [vmem:[%s1328_s8 + $0xe8] sm:$0xff] %v579_v41  ;;  %v578_v47 = vsel %vm514_vm11, %v468_v33, %v546_v39  ;;  %594 = vst [vmem:[%s1328_s8 + $0x60] sm:$0xff] %v562_v46  ;;  %v533_v50 = vmul.f32 0.2, %v403_v42  ;;  %vm517_vm13 = vcmp.ge.f32.partialorder %v483_v43, 0.0  ;;  %vm500_vm14 = vcmp.ge.f32.partialorder %v398_v48, 0.0 }
 0x16d   : > { %610 = vst [vmem:[%s1328_s8 + $0xe0] sm:$0xff] %v578_v47  ;;  %v549_v51 = vmul.f32 0.2, %v483_v43  ;;  %v532_v52 = vmul.f32 0.2, %v398_v48  ;;  %vm516_vm15 = vcmp.ge.f32.partialorder %v478_v49, 0.0 }
 0x16e   : > { %v548_v53 = vmul.f32 0.2, %v478_v49  ;;  %v565_v56 = vsel %vm501_vm12, %v403_v42, %v533_v50 }
 0x16f   : > { %v581_v54 = vsel %vm517_vm13, %v483_v43, %v549_v51  ;;  %597 = vst [vmem:[%s1328_s8 + $0x78] sm:$0xff] %v565_v56  ;;  %v564_v55 = vsel %vm500_vm14, %v398_v48, %v532_v52 }
 0x170   : > { %613 = vst [vmem:[%s1328_s8 + $0xf8] sm:$0xff] %v581_v54  ;;  %v580_v57 = vsel %vm516_vm15, %v478_v49, %v548_v53  ;;  %596 = vst [vmem:[%s1328_s8 + $0x70] sm:$0xff] %v564_v55 }
 0x171   : > { %612 = vst [vmem:[%s1328_s8 + $0xf0] sm:$0xff] %v580_v57 }
 0x172   : > { %1038 = shalt.err (!%p1035_p7)
}
 0x173   : > { %s1039_s30 = scalar_lea.hbm %s1391_s5, 4096  ;;  %s1043_s10 = scalar_lea.hbm %s1444_s3, 8192 }
 0x174   : > { %p1040_p9 = scmp.ne.s32.totalorder %s1391_s5, %s1039_s30  ;;  %p1044_p5 = scmp.lt.u32.totalorder %s1391_s5, %s1444_s3 }
 0x175   : > { %p1045_p11 = scmp.lt.u32.totalorder %s1043_s10, %s1039_s30  ;;  %p1047_p4 = scmp.lt.u32.totalorder %s1039_s30, %s1391_s5 }
 0x176   : > { %p1041_p1 = pnand %p1040_p9, %p1218_p12 }
 0x177   : > { %p1046_p2 = por %p1045_p11, %p1044_p5 }
 0x178   : > { %p1042_p0 = pneg %p1041_p1 }
 0x179   : > { %p1048_p6 = por %p1047_p4, %p1046_p2 }
 0x17b   : > { %p1049_p8 = pnand %p1048_p6, %p1042_p0 }
 0x17d   : > { %1052 = shalt.err (!%p1049_p8)
}
 0x17e   : > { %s1102_s20 = smov 128   ;;  %s1103_s8 = smov 8  }
 0x17f   : > { %912 = dma.vmem_to_hbm [thread:$0]  (%p1218_p12), %s1393_s4, 4096, %s1391_s5, %s615_s11, %s1102_s20, %s1102_s20, %s1103_s8  }
 0x180 PF: > { %s643_s9 = sand.u32 1, %s1083_s12   ;;  %p1459_p10 = scmp.ne.s32.totalorder %s1449_s19, 0 }
 0x181   : > { %p1460_p13 = scmp.ge.s32.totalorder %s1095_s15, 2  ;;  %s644_s16 = scalar_lea.sflag [#allocation4], %s643_s9 }
 0x183   : > { %p923_p3 = pnand %p1460_p13, %p1459_p10 }
 0x185   : > { %1078 = dma.done.wait (!%p923_p3), %s644_s16, 4096  }
 0x186   : > { %1080 = vsyncadd (!%p923_p3), %s644_s16, 4294963200  ;;  %p17_p7 = scmp.ge.s32.totalorder %s1180_s24, 4   ;;  %s1461_s12 = smov %s1087_s13 }
 0x187   : > { %s1462_s13 = smov %s1091_s14  ;;  %s1463_s14 = smov %s1214_s17 }
 0x188   : > { %s1464_s15 = smov %s1180_s24  ;;  %19 = sbr.rel (!%p17_p7) target bundleno = 6 (0x6), region = 81 }
 0x18f   :  { %649 = vsyncpa [#allocation3], 1 }
 0x190   :  { %651 = vsyncpa [#allocation3 + $0x1], 1 }
 0x191   :  { %652 = vsyncpa [#allocation6], 1 }
 0x192   :  { %653 = vsyncpa [#allocation4], 1 }
 0x193   :  { %655 = vsyncpa [#allocation4 + $0x1], 1 }

</bundles_post_ra>
